<compile_context>
chip_gen: v7x
topology: tpu7x:2x2x1
jax: 0.10.0
libtpu: 0.0.40
codegen_flags: <defaults>
</compile_context>

<pallas_src>
import functools

import jax
import jax.numpy as jnp
from jax import lax
from jax.experimental import pallas as pl
from jax.experimental.pallas import tpu as pltpu


def _focal_loss_kernel(logits_ref, target_ref, out_ref, *,
                       n_total, focusing_param, balance_param):
    i = pl.program_id(0)

    @pl.when(i == 0)
    def _init():
        out_ref[...] = jnp.zeros_like(out_ref)

    logits = logits_ref[...].astype(jnp.float32)           # (TN, C)
    tn, c = logits.shape
    tgt = target_ref[...]                                   # (TN, 1) int32

    # Numerically stable per-row log p_target computed entirely from `shifted`
    # (the row_max term cancels: logpt = shifted_t - log(sum(exp(shifted)))).
    row_max = jnp.max(logits, axis=-1, keepdims=True)        # (TN, 1)
    shifted = logits - row_max                               # (TN, C)
    lse = jnp.log(jnp.sum(jnp.exp(shifted), axis=-1, keepdims=True))  # (TN, 1)

    col_idx = lax.broadcasted_iota(jnp.int32, (tn, c), 1)    # (TN, C)
    tgt_shifted = jnp.sum(jnp.where(col_idx == tgt, shifted, 0.0),
                          axis=-1, keepdims=True)            # (TN, 1)
    logpt_rows = tgt_shifted - lse                           # (TN, 1)

    # Mask padded rows of the (possibly partial) last tile.
    row_idx = lax.broadcasted_iota(jnp.int32, (tn, 1), 0) + i * tn
    logpt_rows = jnp.where(row_idx < n_total, logpt_rows, 0.0)

    # Accumulate sum_i logpt_i into the resident (1, 1) output block.
    out_ref[...] += jnp.sum(logpt_rows, keepdims=True)

    @pl.when(i == pl.num_programs(0) - 1)
    def _finalize():
        logpt = out_ref[...] / jnp.float32(n_total)          # = -mean CE, (1, 1)
        pt = jnp.exp(logpt)
        focal = -((1.0 - pt) ** focusing_param) * logpt
        out_ref[...] = (balance_param * focal).astype(out_ref.dtype)


def _pick_tile_rows(n, c, itemsize):
    # Keep each logits tile under ~8 MiB so double-buffered inputs fit the
    # v5e 16 MiB scoped default and leave headroom on v7x's 64 MiB VMEM.
    budget_bytes = 8 * 1024 * 1024
    tn = budget_bytes // max(1, c * itemsize)
    tn = max(8, min(512, (tn // 8) * 8))
    return n if n <= tn else tn


def focal_loss(output, target, focusing_param=8, balance_param=0.25,
               tile_rows=None):
    """output: (N, C) float logits (f32 or bf16); target: (N,) int class indices."""
    n, c = output.shape
    itemsize = jnp.dtype(output.dtype).itemsize
    tn = min(tile_rows, n) if tile_rows is not None else _pick_tile_rows(n, c, itemsize)
    num_tiles = pl.cdiv(n, tn)

    target2d = target.astype(jnp.int32).reshape(n, 1)

    kernel = functools.partial(
        _focal_loss_kernel,
        n_total=n,
        focusing_param=focusing_param,
        balance_param=float(balance_param),
    )

    # Explicit VMEM budget: double-buffered logits + target tiles, with margin.
    vmem_needed = 2 * (tn * c * itemsize + tn * 4) + 4 * 1024
    vmem_limit = int(min(max(2 * vmem_needed, 4 * 1024 * 1024), 48 * 1024 * 1024))

    out = pl.pallas_call(
        kernel,
        out_shape=jax.ShapeDtypeStruct((1, 1), jnp.float32),
        grid=(num_tiles,),
        in_specs=[
            pl.BlockSpec((tn, c), lambda i: (i, 0)),   # logits tile
            pl.BlockSpec((tn, 1), lambda i: (i, 0)),   # target tile
        ],
        out_specs=pl.BlockSpec((1, 1), lambda i: (0, 0)),   # resident accumulator
        compiler_params=pltpu.CompilerParams(
            dimension_semantics=("arbitrary",),
            vmem_limit_bytes=vmem_limit,
        ),
    )(output, target2d)
    return out[0, 0]


def _focal_loss_ref(output, target, focusing_param=8, balance_param=0.25):
    # pure-JAX reference matching F.cross_entropy(mean) + focal transform
    logp = jax.nn.log_softmax(output.astype(jnp.float32), axis=-1)
    n = output.shape[0]
    logpt_rows = logp[jnp.arange(n), target]
    ce = -jnp.mean(logpt_rows)
    logpt = -ce
    pt = jnp.exp(logpt)
    focal = -((1.0 - pt) ** focusing_param) * logpt
    return balance_param * focal


if __name__ == "__main__":
    key = jax.random.PRNGKey(0)
    k_logits, k_target = jax.random.split(key)

    # Small shapes consistent with the module: batch of 8 logits over 32 classes.
    N, C = 8, 32
    output = jax.random.normal(k_logits, (N, C), dtype=jnp.float32)
    target = jax.random.randint(k_target, (N,), 0, C, dtype=jnp.int32)

    loss = focal_loss(output, target)
    jax.block_until_ready(loss)
    ref = _focal_loss_ref(output, target)
    assert jnp.allclose(loss, ref, rtol=1e-5, atol=1e-5), (loss, ref)

    # Exercise the multi-tile grid + tail-masking path (N not a multiple of TN).
    N2, C2 = 20, 32
    output2 = jax.random.normal(k_logits, (N2, C2), dtype=jnp.float32)
    target2 = jax.random.randint(k_target, (N2,), 0, C2, dtype=jnp.int32)
    loss2 = focal_loss(output2, target2, tile_rows=8)
    jax.block_until_ready(loss2)
    ref2 = _focal_loss_ref(output2, target2)
    assert jnp.allclose(loss2, ref2, rtol=1e-5, atol=1e-5), (loss2, ref2)

    print("KERNEL_OK")
</pallas_src>

<mosaic_0001>
module attributes {stable_mosaic.version = 11 : i64} {
  func.func @_focal_loss_kernel(%arg0: i32, %arg1: memref<8x32xf32, #tpu.memory_space<vmem>>, %arg2: memref<8x1xi32, #tpu.memory_space<vmem>>, %arg3: memref<1x1xf32, #tpu.memory_space<vmem>>) attributes {dimension_semantics = [#tpu.dimension_semantics<arbitrary>], iteration_bounds = array<i64: 1>, scalar_prefetch = 0 : i64, scratch_operands = 0 : i64, tpu.core_type = #tpu.core_type<tc>, window_params = [{transform_indices = @transform_0, window_bounds = array<i64: 8, 32>}, {transform_indices = @transform_1, window_bounds = array<i64: 8, 1>}, {pipeline_mode = #tpu.pipeline_mode<synchronous>, transform_indices = @transform_2, window_bounds = array<i64: 1, 1>}]} {
    %c0_i32 = arith.constant 0 : i32
    %0 = arith.cmpi eq, %arg0, %c0_i32 : i32
    %1 = arith.extui %0 : i1 to i32
    %c0_i32_0 = arith.constant 0 : i32
    %2 = arith.cmpi ne, %1, %c0_i32_0 : i32
    scf.if %2 {
      %cst_16 = arith.constant 0.000000e+00 : f32
      %40 = vector.broadcast %cst_16 : f32 to vector<1x1xf32>
      %c0_17 = arith.constant 0 : index
      %c0_18 = arith.constant 0 : index
      %41 = vector.load %arg3[%c0_17, %c0_18] : memref<1x1xf32, #tpu.memory_space<vmem>>, vector<1x1xf32>
      tpu.vector_store %arg3[%c0_17, %c0_18], %40 {strides = array<i32>} : memref<1x1xf32, #tpu.memory_space<vmem>>, vector<1x1xf32>,
    } else {
    }
    %c0 = arith.constant 0 : index
    %c0_1 = arith.constant 0 : index
    %3 = vector.load %arg1[%c0, %c0_1] : memref<8x32xf32, #tpu.memory_space<vmem>>, vector<8x32xf32>
    %c0_2 = arith.constant 0 : index
    %c0_3 = arith.constant 0 : index
    %4 = vector.load %arg2[%c0_2, %c0_3] : memref<8x1xi32, #tpu.memory_space<vmem>>, vector<8x1xi32>
    %cst = arith.constant dense<0xFF800000> : vector<8xf32>
    %5 = vector.multi_reduction <maximumf>, %3, %cst [1] : vector<8x32xf32> to vector<8xf32>
    %6 = vector.shape_cast %5 : vector<8xf32> to vector<8x1xf32>
    %7 = vector.broadcast %6 : vector<8x1xf32> to vector<8x32xf32>
    %8 = arith.subf %3, %7 : vector<8x32xf32>
    %9 = math.exp %8 : vector<8x32xf32>
    %cst_4 = arith.constant dense<0.000000e+00> : vector<8xf32>
    %10 = vector.multi_reduction <add>, %9, %cst_4 [1] : vector<8x32xf32> to vector<8xf32>
    %11 = vector.shape_cast %10 : vector<8xf32> to vector<8x1xf32>
    %12 = math.log %11 : vector<8x1xf32>
    %13 = tpu.iota {dimensions = array<i32: 1>} : vector<8x32xi32>
    %14 = vector.broadcast %4 : vector<8x1xi32> to vector<8x32xi32>
    %15 = arith.cmpi eq, %13, %14 : vector<8x32xi32>
    %cst_5 = arith.constant 0.000000e+00 : f32
    %16 = vector.broadcast %cst_5 : f32 to vector<8x32xf32>
    %17 = arith.select %15, %8, %16 : vector<8x32xi1>, vector<8x32xf32>
    %cst_6 = arith.constant dense<0.000000e+00> : vector<8xf32>
    %18 = vector.multi_reduction <add>, %17, %cst_6 [1] : vector<8x32xf32> to vector<8xf32>
    %19 = vector.shape_cast %18 : vector<8xf32> to vector<8x1xf32>
    %20 = arith.subf %19, %12 : vector<8x1xf32>
    %21 = tpu.iota {dimensions = array<i32: 0>} : vector<8x1xi32>
    %c8_i32 = arith.constant 8 : i32
    %22 = arith.muli %arg0, %c8_i32 : i32
    %23 = vector.broadcast %22 : i32 to vector<8x1xi32>
    %24 = arith.addi %21, %23 : vector<8x1xi32>
    %c8_i32_7 = arith.constant 8 : i32
    %25 = vector.broadcast %c8_i32_7 : i32 to vector<8x1xi32>
    %26 = arith.cmpi slt, %24, %25 : vector<8x1xi32>
    %cst_8 = arith.constant 0.000000e+00 : f32
    %27 = vector.broadcast %cst_8 : f32 to vector<8x1xf32>
    %28 = arith.select %26, %20, %27 : vector<8x1xi1>, vector<8x1xf32>
    %c0_9 = arith.constant 0 : index
    %c0_10 = arith.constant 0 : index
    %29 = vector.load %arg3[%c0_9, %c0_10] : memref<1x1xf32, #tpu.memory_space<vmem>>, vector<1x1xf32>
    %30 = vector.shape_cast %28 : vector<8x1xf32> to vector<1x8x1xf32>
    %cst_11 = arith.constant dense<0.000000e+00> : vector<1xf32>
    %31 = vector.multi_reduction <add>, %30, %cst_11 [1, 2] : vector<1x8x1xf32> to vector<1xf32>
    %32 = vector.shape_cast %31 : vector<1xf32> to vector<1x1x1xf32>
    %33 = vector.extract %32[0, 0, 0] : f32 from vector<1x1x1xf32>
    %34 = vector.broadcast %33 : f32 to vector<1x1xf32>
    %35 = arith.addf %29, %34 : vector<1x1xf32>
    %c0_12 = arith.constant 0 : index
    %c0_13 = arith.constant 0 : index
    %36 = vector.load %arg3[%c0_12, %c0_13] : memref<1x1xf32, #tpu.memory_space<vmem>>, vector<1x1xf32>
    tpu.vector_store %arg3[%c0_12, %c0_13], %35 {strides = array<i32>} : memref<1x1xf32, #tpu.memory_space<vmem>>, vector<1x1xf32>,
    %c0_i32_14 = arith.constant 0 : i32
    %37 = arith.cmpi eq, %arg0, %c0_i32_14 : i32
    %38 = arith.extui %37 : i1 to i32
    %c0_i32_15 = arith.constant 0 : i32
    %39 = arith.cmpi ne, %38, %c0_i32_15 : i32
    scf.if %39 {
      %c0_16 = arith.constant 0 : index
      %c0_17 = arith.constant 0 : index
      %40 = vector.load %arg3[%c0_16, %c0_17] : memref<1x1xf32, #tpu.memory_space<vmem>>, vector<1x1xf32>
      %cst_18 = arith.constant 8.000000e+00 : f32
      %41 = vector.broadcast %cst_18 : f32 to vector<1x1xf32>
      %42 = arith.divf %40, %41 : vector<1x1xf32>
      %43 = math.exp %42 : vector<1x1xf32>
      %cst_19 = arith.constant 1.000000e+00 : f32
      %44 = vector.broadcast %cst_19 : f32 to vector<1x1xf32>
      %45 = arith.subf %44, %43 : vector<1x1xf32>
      %46 = arith.mulf %45, %45 : vector<1x1xf32>
      %47 = arith.mulf %46, %46 : vector<1x1xf32>
      %48 = arith.mulf %47, %47 : vector<1x1xf32>
      %cst_20 = arith.constant 0.000000e+00 : f32
      %49 = vector.broadcast %cst_20 : f32 to vector<1x1xf32>
      %50 = arith.subf %49, %48 : vector<1x1xf32>
      %51 = arith.mulf %50, %42 : vector<1x1xf32>
      %cst_21 = arith.constant 2.500000e-01 : f32
      %52 = vector.broadcast %cst_21 : f32 to vector<1x1xf32>
      %53 = arith.mulf %52, %51 : vector<1x1xf32>
      %c0_22 = arith.constant 0 : index
      %c0_23 = arith.constant 0 : index
      %54 = vector.load %arg3[%c0_22, %c0_23] : memref<1x1xf32, #tpu.memory_space<vmem>>, vector<1x1xf32>
      tpu.vector_store %arg3[%c0_22, %c0_23], %53 {strides = array<i32>} : memref<1x1xf32, #tpu.memory_space<vmem>>, vector<1x1xf32>,
    } else {
    }
    return
  }
  func.func @transform_0(%arg0: i32) -> (i32, i32) {
    %c0_i32 = arith.constant 0 : i32
    %c0_i32_0 = arith.constant 0 : i32
    return %arg0, %c0_i32 : i32, i32
  }
  func.func @transform_1(%arg0: i32) -> (i32, i32) {
    %c0_i32 = arith.constant 0 : i32
    %c0_i32_0 = arith.constant 0 : i32
    return %arg0, %c0_i32 : i32, i32
  }
  func.func @transform_2(%arg0: i32) -> (i32, i32) {
    %c0_i32 = arith.constant 0 : i32
    %c0_i32_0 = arith.constant 0 : i32
    %c0_i32_1 = arith.constant 0 : i32
    return %c0_i32, %c0_i32_0 : i32, i32
  }
}

</mosaic_0001>

<bundles_post_ra>
// kernel: tpu_custom_call.1
= control target key start
LH: loop header
LB: loop body
LE: loop exit
PB: predicated region body
PF: predicated region fallthrough
CT: control target
= control target key end

     0   :  { %vm20_vm0 = vcmask 261120   ;;  %s174_s0 = inlined_call_operand.vmem [shape: f32[8,32], index: 0, kind: input, shape index: {}]   ;;  %s175_s1 = inlined_call_operand.vmem [shape: s32[8,1], index: 1, kind: input, shape index: {}]   ;;  %s176_s2 = inlined_call_operand.hbm [shape: f32[1,1], index: 2, kind: output, shape index: {}]  }
   0x1   :  { %v18_v0 = vld [vmem:[%s174_s0] sm:$0xff] }
   0x2   :  { %7 = vsyncpa [#allocation3], 0  ;;  %v21_v1 = vsel %vm20_vm0, %v18_v0, -inf  ;;  %v132_v2 = vmov 0   ;;  %v19_v3 = vld [vmem:[%s175_s1] sm:$0xff]  ;;  %v32_v7 = vlaneseq  ;;  %vm51_vm2 = vcmask 7168  }
   0x3   :  { %101 = vset.pattern.permute.xlu0 %v132_v2  ;;  %vm16_vm3 = vcmask 0   ;;  %v133_v20 = vmov 0.0   ;;  %s134_s1 = smov [#allocation2]  }
   0x4   :  { %22 = vmax.xlane.f32.xlu0 %v21_v1  ;;  %v33_v8 = vand.u32 127, %v32_v7  ;;  %17 = vst.msk [vmem:[#allocation2] sm:$0x1] %vm16_vm3, %v133_v20  ;;  %s88_s13 = sshll.u32 %s134_s1, 4  ;;  %s89_s13 = int_to_ptr.vmem [resolvable:$true] %s88_s13 }
   0x5   :  { %s108_s14 = scalar_lea.vmem %s89_s13, 16  ;;  %s112_s15 = scalar_lea.vmem %s89_s13, 32 }
   0x6   :  { %p109_p0 = scmp.ne.s32.totalorder %s89_s13, %s108_s14  ;;  %p113_p1 = scmp.lt.s32.totalorder %s89_s13, %s89_s13 }
   0x7   :  { %p114_p2 = scmp.lt.s32.totalorder %s112_s15, %s108_s14 }
   0x9   :  { %p115_p3 = por %p114_p2, %p113_p1 }
   0xb   :  { %v50_v28 = vld [vmem:[#allocation2] sm:$0x1]  ;;  %p116_p4 = pnand %p115_p3, %p109_p0 }
  0x1a   :  { %35 = vperm.xlu0 %101, %v19_v3  }
  0x91   :  { %v23_v4 = vpop.xlane.xlu0 %22 }
  0x92   :  { %v24_v5 = vsub.f32 %v18_v0, %v23_v4 }
  0x94   :  { %v25_v6 = vmul.f32 1.442695, %v24_v5 }
  0x96   :  { %102 = vpow2.f32 %v25_v6 }
  0x99   :  { %v36_v9 = vpop.permute.xlu0 %35 }
  0x9a   :  { %vm37_vm1 = vcmp.eq.s32.totalorder %v33_v8, %v36_v9 }
  0x9b   :  { %v38_v12 = vsel %vm37_vm1, %v24_v5, 0.0 }
  0x9c   :  { %v39_v13 = vsel %vm20_vm0, %v38_v12, 0.0 }
  0xa0   :  { %v103_v10 = vpop.eup %102 }
  0xa1   :  { %v27_v11 = vsel %vm20_vm0, %v103_v10, 0.0 }
  0xa2   :  { %28 = vadd.xlane.f32.xlu1 %v27_v11 }
  0xa6   :  { %40 = vadd.xlane.f32.xlu1 %v39_v13 }
 0x12f   :  { %v29_v14 = vpop.xlane.xlu1 %28 }
 0x130   :  { %104 = vlog2.f32 %v29_v14 }
 0x133   :  { %v41_v17 = vpop.xlane.xlu1 %40 }
 0x13a   :  { %v105_v15 = vpop.eup %104 }
 0x13b   :  { %v31_v16 = vmul.f32 0.6931472, %v105_v15 }
 0x13d   :  { %v42_v18 = vsub.f32 %v41_v17, %v31_v16 }
 0x13f   :  { %v52_v19 = vsel %vm51_vm2, %v42_v18, 0.0 }
 0x140   :  { %53 = vadd.xlane.f32.xlu1 %v52_v19 }
 0x1cd   :  { %v54_v21 = vpop.xlane.xlu1 %53 }
 0x1ce   :  { %v55_v22 = vrot.slane %v54_v21, 4 }
 0x1d0   :  { %v56_v23 = vadd.f32 %v55_v22, %v54_v21 }
 0x1d2   :  { %v57_v24 = vrot.slane %v56_v23, 2 }
 0x1d4   :  { %v58_v25 = vadd.f32 %v57_v24, %v56_v23 }
 0x1d6   :  { %v59_v26 = vrot.slane %v58_v25, 1 }
 0x1d8   :  { %v60_v27 = vadd.f32 %v59_v26, %v58_v25 }
 0x1da   :  { %96 = vpush %v60_v27 }
 0x20b   :  { %s97_s0 = spop %96 }
 0x20c   :  { %v62_v29 = vstv %s97_s0 }
 0x20d   :  { %v63_v30 = vadd.f32 %v62_v29, %v50_v28 }
 0x20f   :  { %65 = vst.msk [vmem:[#allocation2] sm:$0x1] %vm16_vm3, %v63_v30 }
 0x216   :  { %v69_v31 = vld [vmem:[#allocation2] sm:$0x1] }
 0x217   :  { %v71_v32 = vmul.f32 0.125, %v69_v31 }
 0x219   :  { %v72_v33 = vmul.f32 1.442695, %v71_v32 }
 0x21b   :  { %106 = vpow2.f32 %v72_v33 }
 0x225   :  { %v107_v34 = vpop.eup %106 }
 0x226   :  { %v74_v35 = vsub.f32 1.0, %v107_v34 }
 0x228   :  { %v75_v36 = vmul.f32 %v74_v35, %v74_v35 }
 0x22a   :  { %v76_v37 = vmul.f32 %v75_v36, %v75_v36 }
 0x22c   :  { %v77_v38 = vmul.f32 %v76_v37, %v76_v37 }
 0x22e   :  { %v78_v39 = vsub.f32 0.0, %v77_v38 }
 0x230   :  { %v79_v40 = vmul.f32 %v78_v39, %v71_v32 }
 0x232   :  { %v80_v41 = vmul.f32 0.25, %v79_v40 }
 0x234   :  { %81 = vst.msk [vmem:[#allocation2] sm:$0x1] %vm16_vm3, %v80_v41 }
 0x235   :  { %119 = shalt.err (!%p116_p4)
}
 0x236   :  { %s120_s18 = scalar_lea.hbm %s176_s2, 16 }
 0x237   :  { %p121_p5 = scmp.ne.s32.totalorder %s176_s2, %s120_s18  ;;  %p124_p6 = scmp.lt.u32.totalorder %s120_s18, %s176_s2 }
 0x239   :  { %p126_p7 = pnand %p124_p6, %p121_p5 }
 0x23b   :  { %129 = shalt.err (!%p126_p7)
}
 0x23c   :  { %91 = dma.vmem_to_hbm [thread:$0]  %s89_s13, 16, %s176_s2, [#allocation3]  }
 0x23d   :  { %130 = dma.done.wait [#allocation3], 16  }
 0x23e   :  { %131 = vsyncadd [#allocation3], 4294967280 }
 0x23f   :  { %95 = vsyncpa [#allocation3], 1 }

</bundles_post_ra>
